<compile_context>
chip_gen: v5e
topology: v5e:2x2
jax: 0.10.0
libtpu: 0.0.40
codegen_flags: <defaults>
</compile_context>

<pallas_src>
import jax
import jax.numpy as jnp
from jax import lax
from jax.experimental import pallas as pl
from jax.experimental.pallas import tpu as pltpu

NEG_SLOPE = 0.01  # default negative_slope of nn.functional.leaky_relu


def _leaky_relu(h):
    return jnp.where(h > 0, h, NEG_SLOPE * h)


def _round_up(n, m):
    return pl.cdiv(n, m) * m


def mlp_kernel(x_ref, w1_ref, b1_ref, w2_ref, b2_ref, w3_ref, b3_ref,
               w4t_ref, b4_ref, o_ref):
    # x_ref: (tb, 9) natural row-major batch block.
    # w1/w2/w3 are PyTorch layout (out, in) with biases (out, 1);
    # w4t is pre-transposed (in, out) = (8, 5) with bias (1, 5).
    x = x_ref[...]

    # Layer 1: contract feature dims ("NT" dot) -> class-major (16, tb).
    dn_nt = (((1,), (1,)), ((), ()))
    h = lax.dot_general(w1_ref[...], x, dn_nt,
                        precision=lax.Precision.HIGHEST,
                        preferred_element_type=jnp.float32)
    h = _leaky_relu(h + b1_ref[...])                                   # (16, tb)

    # Layers 2-3 stay class-major (dense lane layout, tiny intermediates).
    h = _leaky_relu(jnp.dot(w2_ref[...], h,
                            precision=lax.Precision.HIGHEST,
                            preferred_element_type=jnp.float32) + b2_ref[...])  # (16, tb)
    h = _leaky_relu(jnp.dot(w3_ref[...], h,
                            precision=lax.Precision.HIGHEST,
                            preferred_element_type=jnp.float32) + b3_ref[...])  # (8, tb)

    # Layer 4: contract the class dim ("TN" dot) -> row-major (tb, 5) logits,
    # matching the (B, 5) output layout (no transpose needed anywhere).
    dn_tn = (((0,), (0,)), ((), ()))
    logits = lax.dot_general(h, w4t_ref[...], dn_tn,
                             precision=lax.Precision.HIGHEST,
                             preferred_element_type=jnp.float32) + b4_ref[...]  # (tb, 5)

    # Numerically-stable softmax over the class axis, exact divide.
    z = logits - jnp.max(logits, axis=-1, keepdims=True)
    e = jnp.exp(z)
    o_ref[...] = e / jnp.sum(e, axis=-1, keepdims=True)


def simple_nn_forward(x, params, block_b=8192):
    """x: (B, 9) float32.  params: (w1, b1, w2, b2, w3, b3, w4t, b4) with
    w1..w3 in PyTorch layout (out, in), biases (out, 1), and the last layer
    stored pre-transposed: w4t = fc4.weight.T with shape (8, 5), b4 (1, 5).
    Returns (B, 5) softmax probabilities."""
    w1, b1, w2, b2, w3, b3, w4t, b4 = params
    B, d_in = x.shape
    n_out = w4t.shape[1]

    # Batch tile: multiple of 8 (sublane alignment of the (tb, 9) block),
    # capped by block_b.  Partial last block handled by Pallas OOB clipping.
    tb = min(_round_up(block_b, 8), _round_up(B, 8))
    grid = pl.cdiv(B, tb)

    def const_spec(a):
        # full-array block, same block index every step -> fetched once,
        # stays resident in VMEM across the whole grid.
        return pl.BlockSpec(a.shape, lambda i: (0, 0))

    in_specs = [pl.BlockSpec((tb, d_in), lambda i: (i, 0))] + [
        const_spec(p) for p in (w1, b1, w2, b2, w3, b3, w4t, b4)
    ]
    out_spec = pl.BlockSpec((tb, n_out), lambda i: (i, 0))

    return pl.pallas_call(
        mlp_kernel,
        out_shape=jax.ShapeDtypeStruct((B, n_out), jnp.float32),
        grid=(grid,),
        in_specs=in_specs,
        out_specs=out_spec,
        compiler_params=pltpu.CompilerParams(
            dimension_semantics=("parallel",),      # megacore-shard batch on v7x
            vmem_limit_bytes=48 * 1024 * 1024),     # above v5e's 16 MiB default,
                                                    # below v7x's 64 MiB physical
    )(x, w1, b1, w2, b2, w3, b3, w4t, b4)


def init_params(key):
    """Deterministic synthetic init matching the nn.Linear shapes.
    w1..w3 kept in PyTorch layout (out, in) with biases (out, 1); the last
    layer is stored pre-transposed (in, out) with bias (1, out) so the kernel
    needs no transposes."""
    dims = [(9, 16), (16, 16), (16, 8), (8, 5)]
    params = []
    for i, (din, dout) in enumerate(dims):
        kw, kb = jax.random.split(jax.random.fold_in(key, i))
        w = jax.random.normal(kw, (dout, din), jnp.float32) * 0.1   # (out, in)
        b = jax.random.normal(kb, (dout,), jnp.float32) * 0.1
        if i == len(dims) - 1:
            params += [w.T, b.reshape(1, dout)]     # fc4: (in, out), (1, out)
        else:
            params += [w, b.reshape(dout, 1)]       # class-major bias (out, 1)
    return tuple(params)


def _reference(x, params):
    w1, b1, w2, b2, w3, b3, w4t, b4 = params
    h = jax.nn.leaky_relu(x @ w1.T + b1.T, NEG_SLOPE)
    h = jax.nn.leaky_relu(h @ w2.T + b2.T, NEG_SLOPE)
    h = jax.nn.leaky_relu(h @ w3.T + b3.T, NEG_SLOPE)
    return jax.nn.softmax(h @ w4t + b4, axis=-1)


if __name__ == "__main__":
    key = jax.random.PRNGKey(0)
    kx, kp = jax.random.split(key)

    B = 8
    x = jax.random.normal(kx, (B, 9), jnp.float32)
    params = init_params(kp)

    out = jax.block_until_ready(simple_nn_forward(x, params))
    ref = _reference(x, params)

    assert out.shape == (B, 5)
    assert jnp.allclose(out, ref, atol=1e-3, rtol=1e-3), "mismatch vs JAX reference"
    # exact divide in the kernel -> rows sum to 1 to float32 precision
    assert jnp.allclose(jnp.sum(out, axis=-1), 1.0, atol=1e-5), "rows must sum to ~1"

    print("KERNEL_OK")
</pallas_src>

<mosaic_0001>
module attributes {stable_mosaic.version = 11 : i64} {
  func.func @mlp_kernel(%arg0: i32, %arg1: memref<8x9xf32, #tpu.memory_space<vmem>>, %arg2: memref<16x9xf32, #tpu.memory_space<vmem>>, %arg3: memref<16x1xf32, #tpu.memory_space<vmem>>, %arg4: memref<16x16xf32, #tpu.memory_space<vmem>>, %arg5: memref<16x1xf32, #tpu.memory_space<vmem>>, %arg6: memref<8x16xf32, #tpu.memory_space<vmem>>, %arg7: memref<8x1xf32, #tpu.memory_space<vmem>>, %arg8: memref<8x5xf32, #tpu.memory_space<vmem>>, %arg9: memref<1x5xf32, #tpu.memory_space<vmem>>, %arg10: memref<8x5xf32, #tpu.memory_space<vmem>>) attributes {dimension_semantics = [#tpu.dimension_semantics<parallel>], iteration_bounds = array<i64: 1>, scalar_prefetch = 0 : i64, scratch_operands = 0 : i64, tpu.core_type = #tpu.core_type<tc>, window_params = [{transform_indices = @transform_0, window_bounds = array<i64: 8, 9>}, {pipeline_mode = #tpu.pipeline_mode<synchronous>, transform_indices = @transform_1, window_bounds = array<i64: 16, 9>}, {pipeline_mode = #tpu.pipeline_mode<synchronous>, transform_indices = @transform_2, window_bounds = array<i64: 16, 1>}, {pipeline_mode = #tpu.pipeline_mode<synchronous>, transform_indices = @transform_3, window_bounds = array<i64: 16, 16>}, {pipeline_mode = #tpu.pipeline_mode<synchronous>, transform_indices = @transform_4, window_bounds = array<i64: 16, 1>}, {pipeline_mode = #tpu.pipeline_mode<synchronous>, transform_indices = @transform_5, window_bounds = array<i64: 8, 16>}, {pipeline_mode = #tpu.pipeline_mode<synchronous>, transform_indices = @transform_6, window_bounds = array<i64: 8, 1>}, {pipeline_mode = #tpu.pipeline_mode<synchronous>, transform_indices = @transform_7, window_bounds = array<i64: 8, 5>}, {pipeline_mode = #tpu.pipeline_mode<synchronous>, transform_indices = @transform_8, window_bounds = array<i64: 1, 5>}, {transform_indices = @transform_9, window_bounds = array<i64: 8, 5>}]} {
    %c0 = arith.constant 0 : index
    %c0_0 = arith.constant 0 : index
    %0 = vector.load %arg1[%c0, %c0_0] : memref<8x9xf32, #tpu.memory_space<vmem>>, vector<8x9xf32>
    %c0_1 = arith.constant 0 : index
    %c0_2 = arith.constant 0 : index
    %1 = vector.load %arg2[%c0_1, %c0_2] : memref<16x9xf32, #tpu.memory_space<vmem>>, vector<16x9xf32>
    %cst = arith.constant dense<0.000000e+00> : vector<16x8xf32>
    %2 = tpu.matmul %1, %0, %cst {dimension_numbers = #tpu.dot_dimension_numbers<[1], [1], [0], [0], [0, 0, 1, 0], [], []>, precision = #tpu.contract_precision<fp32>} : vector<16x9xf32>, vector<8x9xf32>, vector<16x8xf32> -> vector<16x8xf32>
    %c0_3 = arith.constant 0 : index
    %c0_4 = arith.constant 0 : index
    %3 = vector.load %arg3[%c0_3, %c0_4] : memref<16x1xf32, #tpu.memory_space<vmem>>, vector<16x1xf32>
    %4 = vector.broadcast %3 : vector<16x1xf32> to vector<16x8xf32>
    %5 = arith.addf %2, %4 : vector<16x8xf32>
    %cst_5 = arith.constant 0.000000e+00 : f32
    %6 = vector.broadcast %cst_5 : f32 to vector<16x8xf32>
    %7 = arith.cmpf ogt, %5, %6 : vector<16x8xf32>
    %cst_6 = arith.constant 0.00999999977 : f32
    %8 = vector.broadcast %cst_6 : f32 to vector<16x8xf32>
    %9 = arith.mulf %8, %5 : vector<16x8xf32>
    %10 = arith.select %7, %5, %9 : vector<16x8xi1>, vector<16x8xf32>
    %c0_7 = arith.constant 0 : index
    %c0_8 = arith.constant 0 : index
    %11 = vector.load %arg4[%c0_7, %c0_8] : memref<16x16xf32, #tpu.memory_space<vmem>>, vector<16x16xf32>
    %cst_9 = arith.constant dense<0.000000e+00> : vector<16x8xf32>
    %12 = tpu.matmul %11, %10, %cst_9 {dimension_numbers = #tpu.dot_dimension_numbers<[1], [0], [0], [1], [0, 0, 1, 1], [], []>, precision = #tpu.contract_precision<fp32>} : vector<16x16xf32>, vector<16x8xf32>, vector<16x8xf32> -> vector<16x8xf32>
    %c0_10 = arith.constant 0 : index
    %c0_11 = arith.constant 0 : index
    %13 = vector.load %arg5[%c0_10, %c0_11] : memref<16x1xf32, #tpu.memory_space<vmem>>, vector<16x1xf32>
    %14 = vector.broadcast %13 : vector<16x1xf32> to vector<16x8xf32>
    %15 = arith.addf %12, %14 : vector<16x8xf32>
    %cst_12 = arith.constant 0.000000e+00 : f32
    %16 = vector.broadcast %cst_12 : f32 to vector<16x8xf32>
    %17 = arith.cmpf ogt, %15, %16 : vector<16x8xf32>
    %cst_13 = arith.constant 0.00999999977 : f32
    %18 = vector.broadcast %cst_13 : f32 to vector<16x8xf32>
    %19 = arith.mulf %18, %15 : vector<16x8xf32>
    %20 = arith.select %17, %15, %19 : vector<16x8xi1>, vector<16x8xf32>
    %c0_14 = arith.constant 0 : index
    %c0_15 = arith.constant 0 : index
    %21 = vector.load %arg6[%c0_14, %c0_15] : memref<8x16xf32, #tpu.memory_space<vmem>>, vector<8x16xf32>
    %cst_16 = arith.constant dense<0.000000e+00> : vector<8x8xf32>
    %22 = tpu.matmul %21, %20, %cst_16 {dimension_numbers = #tpu.dot_dimension_numbers<[1], [0], [0], [1], [0, 0, 1, 1], [], []>, precision = #tpu.contract_precision<fp32>} : vector<8x16xf32>, vector<16x8xf32>, vector<8x8xf32> -> vector<8x8xf32>
    %c0_17 = arith.constant 0 : index
    %c0_18 = arith.constant 0 : index
    %23 = vector.load %arg7[%c0_17, %c0_18] : memref<8x1xf32, #tpu.memory_space<vmem>>, vector<8x1xf32>
    %24 = vector.broadcast %23 : vector<8x1xf32> to vector<8x8xf32>
    %25 = arith.addf %22, %24 : vector<8x8xf32>
    %cst_19 = arith.constant 0.000000e+00 : f32
    %26 = vector.broadcast %cst_19 : f32 to vector<8x8xf32>
    %27 = arith.cmpf ogt, %25, %26 : vector<8x8xf32>
    %cst_20 = arith.constant 0.00999999977 : f32
    %28 = vector.broadcast %cst_20 : f32 to vector<8x8xf32>
    %29 = arith.mulf %28, %25 : vector<8x8xf32>
    %30 = arith.select %27, %25, %29 : vector<8x8xi1>, vector<8x8xf32>
    %c0_21 = arith.constant 0 : index
    %c0_22 = arith.constant 0 : index
    %31 = vector.load %arg8[%c0_21, %c0_22] : memref<8x5xf32, #tpu.memory_space<vmem>>, vector<8x5xf32>
    %cst_23 = arith.constant dense<0.000000e+00> : vector<8x5xf32>
    %32 = tpu.matmul %30, %31, %cst_23 {dimension_numbers = #tpu.dot_dimension_numbers<[0], [0], [1], [1], [0, 1, 1, 1], [], []>, precision = #tpu.contract_precision<fp32>} : vector<8x8xf32>, vector<8x5xf32>, vector<8x5xf32> -> vector<8x5xf32>
    %c0_24 = arith.constant 0 : index
    %c0_25 = arith.constant 0 : index
    %33 = vector.load %arg9[%c0_24, %c0_25] : memref<1x5xf32, #tpu.memory_space<vmem>>, vector<1x5xf32>
    %34 = vector.broadcast %33 : vector<1x5xf32> to vector<8x5xf32>
    %35 = arith.addf %32, %34 : vector<8x5xf32>
    %cst_26 = arith.constant dense<0xFF800000> : vector<8xf32>
    %36 = vector.multi_reduction <maximumf>, %35, %cst_26 [1] : vector<8x5xf32> to vector<8xf32>
    %37 = vector.shape_cast %36 : vector<8xf32> to vector<8x1xf32>
    %38 = vector.broadcast %37 : vector<8x1xf32> to vector<8x5xf32>
    %39 = arith.subf %35, %38 : vector<8x5xf32>
    %40 = math.exp %39 : vector<8x5xf32>
    %cst_27 = arith.constant dense<0.000000e+00> : vector<8xf32>
    %41 = vector.multi_reduction <add>, %40, %cst_27 [1] : vector<8x5xf32> to vector<8xf32>
    %42 = vector.shape_cast %41 : vector<8xf32> to vector<8x1xf32>
    %43 = vector.broadcast %42 : vector<8x1xf32> to vector<8x5xf32>
    %44 = arith.divf %40, %43 : vector<8x5xf32>
    %c0_28 = arith.constant 0 : index
    %c0_29 = arith.constant 0 : index
    %45 = vector.load %arg10[%c0_28, %c0_29] : memref<8x5xf32, #tpu.memory_space<vmem>>, vector<8x5xf32>
    tpu.vector_store %arg10[%c0_28, %c0_29], %44 {strides = array<i32>} : memref<8x5xf32, #tpu.memory_space<vmem>>, vector<8x5xf32>,
    return
  }
  func.func @transform_0(%arg0: i32) -> (i32, i32) {
    %c0_i32 = arith.constant 0 : i32
    %c0_i32_0 = arith.constant 0 : i32
    return %arg0, %c0_i32 : i32, i32
  }
  func.func @transform_1(%arg0: i32) -> (i32, i32) {
    %c0_i32 = arith.constant 0 : i32
    %c0_i32_0 = arith.constant 0 : i32
    %c0_i32_1 = arith.constant 0 : i32
    return %c0_i32, %c0_i32_0 : i32, i32
  }
  func.func @transform_2(%arg0: i32) -> (i32, i32) {
    %c0_i32 = arith.constant 0 : i32
    %c0_i32_0 = arith.constant 0 : i32
    %c0_i32_1 = arith.constant 0 : i32
    return %c0_i32, %c0_i32_0 : i32, i32
  }
  func.func @transform_3(%arg0: i32) -> (i32, i32) {
    %c0_i32 = arith.constant 0 : i32
    %c0_i32_0 = arith.constant 0 : i32
    %c0_i32_1 = arith.constant 0 : i32
    return %c0_i32, %c0_i32_0 : i32, i32
  }
  func.func @transform_4(%arg0: i32) -> (i32, i32) {
    %c0_i32 = arith.constant 0 : i32
    %c0_i32_0 = arith.constant 0 : i32
    %c0_i32_1 = arith.constant 0 : i32
    return %c0_i32, %c0_i32_0 : i32, i32
  }
  func.func @transform_5(%arg0: i32) -> (i32, i32) {
    %c0_i32 = arith.constant 0 : i32
    %c0_i32_0 = arith.constant 0 : i32
    %c0_i32_1 = arith.constant 0 : i32
    return %c0_i32, %c0_i32_0 : i32, i32
  }
  func.func @transform_6(%arg0: i32) -> (i32, i32) {
    %c0_i32 = arith.constant 0 : i32
    %c0_i32_0 = arith.constant 0 : i32
    %c0_i32_1 = arith.constant 0 : i32
    return %c0_i32, %c0_i32_0 : i32, i32
  }
  func.func @transform_7(%arg0: i32) -> (i32, i32) {
    %c0_i32 = arith.constant 0 : i32
    %c0_i32_0 = arith.constant 0 : i32
    %c0_i32_1 = arith.constant 0 : i32
    return %c0_i32, %c0_i32_0 : i32, i32
  }
  func.func @transform_8(%arg0: i32) -> (i32, i32) {
    %c0_i32 = arith.constant 0 : i32
    %c0_i32_0 = arith.constant 0 : i32
    %c0_i32_1 = arith.constant 0 : i32
    return %c0_i32, %c0_i32_0 : i32, i32
  }
  func.func @transform_9(%arg0: i32) -> (i32, i32) {
    %c0_i32 = arith.constant 0 : i32
    %c0_i32_0 = arith.constant 0 : i32
    return %arg0, %c0_i32 : i32, i32
  }
}

</mosaic_0001>

<bundles_post_ra>
// kernel: tpu_custom_call.1
= control target key start
LH: loop header
LB: loop body
LE: loop exit
PB: predicated region body
PF: predicated region fallthrough
CT: control target
= control target key end

     0   :  { %14 = vsyncpa [#allocation3], 0  ;;  %s1082_s0 = inlined_call_operand.vmem [shape: f32[8,9], index: 0, kind: input, shape index: {}]   ;;  %s1083_s1 = inlined_call_operand.vmem [shape: f32[16,9], index: 1, kind: input, shape index: {}]   ;;  %s1084_s2 = inlined_call_operand.vmem [shape: f32[16,1], index: 2, kind: input, shape index: {}]   ;;  %s1085_s3 = inlined_call_operand.vmem [shape: f32[16,16], index: 3, kind: input, shape index: {}]   ;;  %s1086_s4 = inlined_call_operand.vmem [shape: f32[16,1], index: 4, kind: input, shape index: {}]   ;;  %s1087_s5 = inlined_call_operand.hbm [shape: f32[8,16], index: 5, kind: input, shape index: {}]   ;;  %s1088_s6 = inlined_call_operand.vmem [shape: f32[8,1], index: 6, kind: input, shape index: {}]   ;;  %s1089_s7 = inlined_call_operand.hbm [shape: f32[8,5], index: 7, kind: input, shape index: {}]   ;;  %s1090_s8 = inlined_call_operand.vmem [shape: f32[1,5], index: 8, kind: input, shape index: {}]   ;;  %s1091_s9 = inlined_call_operand.hbm [shape: f32[8,5], index: 9, kind: output, shape index: {}]  }
   0x1   :  { %15 = vsyncpa [#allocation6], 0 }
   0x2   :  { %16 = vsyncpa [#allocation4], 0  ;;  %s32_s11 = sshll.u32 %s1087_s5, 4  ;;  %s980_s12 = smov [#allocation2]   ;;  %s33_s11 = int_to_ptr.hbm [resolvable:$true] %s32_s11 }
   0x3   :  { %s34_s13 = sshll.u32 %s980_s12, 4  ;;  %s45_s16 = sshll.u32 %s1089_s7, 4  ;;  %s35_s13 = int_to_ptr.vmem [resolvable:$true] %s34_s13  ;;  %s46_s16 = int_to_ptr.hbm [resolvable:$true] %s45_s16 }
   0x4   :  { %37 = dma.hbm_to_vmem [thread:$0]  %s33_s11, 128, %s35_s13, [#allocation3]  }
   0x5   :  { %s981_s17 = smov [#allocation5]  }
   0x6   :  { %s47_s18 = sshll.u32 %s981_s17, 4  ;;  %s48_s18 = int_to_ptr.vmem [resolvable:$true] %s47_s18 }
   0x7   :  { %50 = dma.hbm_to_vmem [thread:$0]  %s46_s16, 128, %s48_s18, [#allocation6]  }
   0x8   :  { %974 = dma.done.wait [#allocation3], 128  }
   0x9   :  { %975 = vsyncadd [#allocation3], 4294967168 }
   0xa   :  { %976 = dma.done.wait [#allocation6], 128  }
   0xb   :  { %977 = vsyncadd [#allocation6], 4294967168  ;;  %v982_v0 = vmov 0   ;;  %vm76_vm0 = vcmask 72704   ;;  %v61_v1 = vld [vmem:[%s1082_s0] sm:$0xff]  ;;  %v65_v3 = vld [vmem:[%s1084_s2 + $0x8] sm:$0xff] }
   0xc   :  { %894 = vset.pattern.permute.xlu0 %v982_v0  ;;  %895 = vset.pattern.permute.xlu1 %v982_v0  ;;  %v62_v2 = vld [vmem:[%s1083_s1] sm:$0xff]  ;;  %v84_v4 = vsel %vm76_vm0, %v61_v1, 0  ;;  %v63_v6 = vld [vmem:[%s1083_s1 + $0x8] sm:$0xff]  ;;  %vm283_vm1 = vcmask 130048   ;;  %vm695_vm7 = vcmask 64512   ;;  %vm845_vm8 = vcmask 39936  }
   0xd   :  { %896 = vset.pattern.permute.xlu2 %v982_v0  ;;  %v78_v5 = vsel %vm76_vm0, %v62_v2, 0  ;;  %73 = vperm.xlu0 %894, %v65_v3   ;;  %v101_v7 = vand.u32 4294901760, %v84_v4  ;;  %v81_v9 = vsel %vm76_vm0, %v63_v6, 0  ;;  %v64_v16 = vld [vmem:[%s1084_s2] sm:$0xff]  ;;  %v272_v43 = vld [vmem:[%s1086_s4 + $0x8] sm:$0xff]  ;;  %s878_s15 = sshll.u32 %s1091_s9, 4  ;;  %s879_s15 = int_to_ptr.hbm [resolvable:$true] %s878_s15 }
   0xe   :  { %v103_v8 = vand.u32 4294901760, %v78_v5  ;;  %v111_v10 = vand.u32 4294901760, %v81_v9  ;;  %v269_v36 = vld [vmem:[%s1085_s3] sm:$0xff]  ;;  %280 = vperm.xlu1 %895, %v272_v43   ;;  %v270_v49 = vld [vmem:[%s1085_s3 + $0x8] sm:$0xff] }
   0xf   :  { %v136_v11 = vsub.f32 %v84_v4, %v101_v7  ;;  %102 = vmatpush.xpose.msra.mxu0 %v101_v7  ;;  %195 = vmatpush.xpose.msra.mxu3 %v101_v7  ;;  %v285_v39 = vsel %vm283_vm1, %v269_v36, 0  ;;  %v288_v53 = vsel %vm283_vm1, %v270_v49, 0  ;;  %v271_v54 = vld [vmem:[%s1086_s4] sm:$0xff] }
  0x10   :  { %v104_v12 = vsub.f32 %v78_v5, %v103_v8  ;;  %v112_v13 = vsub.f32 %v81_v9, %v111_v10  ;;  %v308_v44 = vand.u32 4294901760, %v285_v39  ;;  %v316_v59 = vand.u32 4294901760, %v288_v53 }
  0x11   :  { %167 = vmatpush.xpose.msra.mxu2 %v136_v11  ;;  %v137_v15 = vand.u32 4294901760, %v136_v11 }
  0x12   :  { %v105_v14 = vand.u32 4294901760, %v104_v12  ;;  %v113_v19 = vand.u32 4294901760, %v112_v13  ;;  %v309_v51 = vsub.f32 %v285_v39, %v308_v44  ;;  %v317_v1 = vsub.f32 %v288_v53, %v316_v59 }
  0x13   :  { %v138_v18 = vsub.f32 %v136_v11, %v137_v15  ;;  %227 = vmatpush.xpose.msrb.mxu0 %v137_v15 }
  0x14   :  { %v106_v17 = vsub.f32 %v104_v12, %v105_v14  ;;  %199 = vmatmul.f32.vlgmr.msra.gmra.mxu3 %v105_v14  ;;  %170 = vmatmul.f32.vlgmr.msra.gmra.mxu2 %v104_v12  ;;  %v114_v22 = vsub.f32 %v112_v13, %v113_v19  ;;  %v310_v58 = vand.u32 4294901760, %v309_v51  ;;  %v318_v6 = vand.u32 4294901760, %v317_v1 }
  0x15   :  { %68 = vperm.xlu0 %894, %v64_v16   ;;  %v139_v21 = vand.u32 4294901760, %v138_v18 }
  0x16   :  { %v107_v20 = vand.u32 4294901760, %v106_v17  ;;  %v115_v23 = vand.u32 4294901760, %v114_v22  ;;  %275 = vperm.xlu1 %895, %v271_v54   ;;  %v311_v0 = vsub.f32 %v309_v51, %v310_v58 }
  0x17   :  { %140 = vmatpush.xpose.msra.mxu1 %v139_v21 }
  0x18   :  { %108 = vmatmul.f32.vlgmr.msra.gmra.mxu0 %v107_v20  ;;  %v312_v5 = vand.u32 4294901760, %v311_v0 }
  0x1a   :  { %142 = vmatmul.f32.vlgmr.msra.gmra.mxu1 %v103_v8 }
  0x1b   :  { %253 = vmatpush.xpose.msrb.mxu1 %v101_v7 }
  0x1c   :  { %205 = vmatmul.f32.gmra.mxu3 %v113_v19  ;;  %175 = vmatmul.f32.gmra.mxu2 %v112_v13 }
  0x20   :  { %116 = vmatmul.f32.gmra.mxu0 %v115_v23 }
  0x22   :  { %146 = vmatmul.f32.gmra.mxu1 %v111_v10 }
  0x28   :  { %229 = vmatmul.f32.vlgmr.msrb.gmra.mxu0 %v103_v8 }
  0x2a   :  { %255 = vmatmul.f32.vlgmr.msrb.gmra.mxu1 %v103_v8 }
  0x30   :  { %233 = vmatmul.f32.gmra.mxu0 %v111_v10 }
  0x32   :  { %259 = vmatmul.f32.gmra.mxu1 %v111_v10  ;;  %v319_v10 = vsub.f32 %v317_v1, %v318_v6 }
  0x34   :  { %v320_v14 = vand.u32 4294901760, %v319_v10 }
  0x7f   :  { %v74_v24 = vpop.permute.xlu0 %73 }
  0x80   :  { %v281_v16 = vpop.permute.xlu1 %280 }
  0x87   :  { %v69_v26 = vpop.permute.xlu0 %68 }
  0x88   :  { %v276_v18 = vpop.permute.xlu1 %275 }
  0x95   :  { %v109_v25 = vpop.f32.mrf.mxu0 }
  0x96   :  { %v110_v27 = vadd.f32 %v109_v25, %v69_v26 }
  0x97   :  { %v143_v28 = vpop.f32.mrf.mxu1  ;;  %v171_v29 = vpop.f32.mrf.mxu2 }
  0x98   :  { %v144_v30 = vadd.f32 %v143_v28, %v110_v27  ;;  %v200_v32 = vpop.f32.mrf.mxu3  ;;  %v486_v28 = vld [vmem:[#allocation2] sm:$0xff] }
  0x9a   :  { %v172_v33 = vadd.f32 %v171_v29, %v144_v30  ;;  %v494_v30 = vsel %vm283_vm1, %v486_v28, 0  ;;  %v897_v28 = vld [vmem:[%s1090_s8] ss:$0 sm:$0xff]  ;;  %s983_s8 = smov [#allocation7]  }
  0x9b   :  { %s876_s12 = sshll.u32 %s983_s8, 4  ;;  %s877_s12 = int_to_ptr.vmem [resolvable:$true] %s876_s12 }
  0x9c   :  { %v201_v37 = vadd.f32 %v200_v32, %v172_v33 }
  0x9d   :  { %v117_v31 = vpop.f32.mrf.mxu0 }
  0x9e   :  { %v118_v34 = vadd.f32 %v117_v31, %v74_v24 }
  0x9f   :  { %v147_v35 = vpop.f32.mrf.mxu1  ;;  %v176_v40 = vpop.f32.mrf.mxu2 }
  0xa0   :  { %v148_v38 = vadd.f32 %v147_v35, %v118_v34  ;;  %v206_v47 = vpop.f32.mrf.mxu3  ;;  %v514_v35 = vand.u32 4294901760, %v494_v30 }
  0xa2   :  { %v177_v45 = vadd.f32 %v176_v40, %v148_v38 }
  0xa4   :  { %v207_v52 = vadd.f32 %v206_v47, %v177_v45 }
  0xa5   :  { %v230_v41 = vpop.f32.mrf.mxu0 }
  0xa6   :  { %v231_v42 = vadd.f32 %v230_v41, %v201_v37  ;;  %v515_v41 = vsub.f32 %v494_v30, %v514_v35 }
  0xa7   :  { %v256_v46 = vpop.f32.mrf.mxu1 }
  0xa8   :  { %v257_v48 = vadd.f32 %v256_v46, %v231_v42  ;;  %v487_v42 = vld [vmem:[%s1088_s6] sm:$0xff]  ;;  %v516_v47 = vand.u32 4294901760, %v515_v41 }
  0xa9   :  { %490 = vperm.xlu2 %896, %v487_v42  }
  0xaa   :  { %vm263_vm2 = vcmp.gt.f32.partialorder %v257_v48, 0.0  ;;  %v265_v50 = vmul.f32 0.01, %v257_v48 }
  0xac   :  { %v267_v55 = vsel %vm263_vm2, %v257_v48, %v265_v50 }
  0xad   :  { %v234_v56 = vpop.f32.mrf.mxu0  ;;  %v306_v60 = vand.u32 4294901760, %v267_v55 }
  0xae   :  { %v235_v57 = vadd.f32 %v234_v56, %v207_v52  ;;  %v517_v52 = vsub.f32 %v515_v41, %v516_v47 }
  0xaf   :  { %v260_v61 = vpop.f32.mrf.mxu1  ;;  %v346_v2 = vsub.f32 %v267_v55, %v306_v60 }
  0xb0   :  { %v261_v62 = vadd.f32 %v260_v61, %v235_v57  ;;  %v518_v56 = vand.u32 4294901760, %v517_v52 }
  0xb1   :  { %v347_v8 = vand.u32 4294901760, %v346_v2 }
  0xb2   :  { %vm264_vm3 = vcmp.gt.f32.partialorder %v261_v62, 0.0  ;;  %v266_v63 = vmul.f32 0.01, %v261_v62 }
  0xb3   :  { %v348_v12 = vsub.f32 %v346_v2, %v347_v8 }
  0xb4   :  { %v268_v3 = vsel %vm264_vm3, %v261_v62, %v266_v63 }
  0xb5   :  { %v304_v4 = vand.u32 4294901760, %v268_v3  ;;  %v349_v15 = vand.u32 4294901760, %v348_v12 }
  0xb7   :  { %v340_v7 = vsub.f32 %v268_v3, %v304_v4  ;;  %305 = vmatpush.msrb.mxu2 %v304_v4  ;;  %406 = vmatpush.msra.mxu1 %v304_v4 }
  0xb9   :  { %307 = vmatpush.msrb.mxu2 %v306_v60  ;;  %376 = vmatpush.msra.mxu0 %v340_v7  ;;  %v341_v9 = vand.u32 4294901760, %v340_v7 }
  0xba   :  { %408 = vmatpush.msra.mxu1 %v306_v60  ;;  %313 = vmatmul.f32.vlgmr.msrb.gmra.mxu2 %v312_v5 }
  0xbb   :  { %379 = vmatpush.msra.mxu0 %v346_v2  ;;  %439 = vmatpush.msra.mxu2 %v341_v9  ;;  %v342_v11 = vsub.f32 %v340_v7, %v341_v9 }
  0xbc   :  { %382 = vmatmul.f32.vlgmr.msra.gmra.mxu0 %v309_v51  ;;  %412 = vmatmul.f32.vlgmr.msra.gmra.mxu1 %v310_v58 }
  0xbd   :  { %443 = vmatpush.msra.mxu2 %v347_v8  ;;  %v343_v13 = vand.u32 4294901760, %v342_v11 }
  0xbf   :  { %344 = vmatpush.msrb.mxu3 %v343_v13 }
  0xc1   :  { %350 = vmatpush.msrb.mxu3 %v349_v15  ;;  %v658_v15 = vld [vmem:[#allocation5] sm:$0xff] }
  0xc2   :  { %321 = vmatmul.f32.gmra.mxu2 %v320_v14  ;;  %352 = vmatmul.f32.vlgmr.msrb.gmra.mxu3 %v308_v44 }
  0xc3   :  { %468 = vmatpush.msra.mxu3 %v304_v4 }
  0xc4   :  { %387 = vmatmul.f32.gmra.mxu0 %v317_v1  ;;  %418 = vmatmul.f32.gmra.mxu1 %v318_v6 }
  0xc5   :  { %470 = vmatpush.msra.mxu3 %v306_v60 }
  0xca   :  { %356 = vmatmul.f32.gmra.mxu3 %v316_v59  ;;  %445 = vmatmul.f32.vlgmr.msra.gmra.mxu2 %v308_v44 }
  0xd2   :  { %449 = vmatmul.f32.gmra.mxu2 %v316_v59  ;;  %472 = vmatmul.f32.vlgmr.msra.gmra.mxu3 %v308_v44 }
  0xda   :  { %476 = vmatmul.f32.gmra.mxu3 %v316_v59 }
 0x103   :  { %v491_v0 = vpop.permute.xlu2 %490 }
 0x139   :  { %v383_v22 = vpop.f32.mrf.mxu0  ;;  %v413_v24 = vpop.f32.mrf.mxu1 }
 0x13d   :  { %v314_v17 = vpop.f32.mrf.mxu2 }
 0x13e   :  { %v315_v21 = vadd.f32 %v314_v17, %v276_v18 }
 0x141   :  { %v388_v33 = vpop.f32.mrf.mxu0  ;;  %v419_v39 = vpop.f32.mrf.mxu1 }
 0x145   :  { %v322_v19 = vpop.f32.mrf.mxu2  ;;  %v353_v20 = vpop.f32.mrf.mxu3 }
 0x146   :  { %v354_v23 = vadd.f32 %v353_v20, %v315_v21  ;;  %v323_v26 = vadd.f32 %v322_v19, %v281_v16  ;;  %v714_v16 = vand.u32 4294901760, %v658_v15 }
 0x148   :  { %v384_v27 = vadd.f32 %v383_v22, %v354_v23  ;;  %v741_v17 = vsub.f32 %v658_v15, %v714_v16 }
 0x14a   :  { %v414_v31 = vadd.f32 %v413_v24, %v384_v27  ;;  %v742_v18 = vand.u32 4294901760, %v741_v17 }
 0x14c   :  { %v743_v19 = vsub.f32 %v741_v17, %v742_v18 }
 0x14d   :  { %v357_v25 = vpop.f32.mrf.mxu3  ;;  %v446_v29 = vpop.f32.mrf.mxu2 }
 0x14e   :  { %v358_v32 = vadd.f32 %v357_v25, %v323_v26  ;;  %v447_v34 = vadd.f32 %v446_v29, %v414_v31  ;;  %v744_v20 = vand.u32 4294901760, %v743_v19 }
 0x150   :  { %v389_v37 = vadd.f32 %v388_v33, %v358_v32 }
 0x152   :  { %v420_v44 = vadd.f32 %v419_v39, %v389_v37 }
 0x155   :  { %v473_v36 = vpop.f32.mrf.mxu3  ;;  %v450_v43 = vpop.f32.mrf.mxu2 }
 0x156   :  { %v474_v38 = vadd.f32 %v473_v36, %v447_v34  ;;  %v451_v46 = vadd.f32 %v450_v43, %v420_v44 }
 0x158   :  { %vm480_vm4 = vcmp.gt.f32.partialorder %v474_v38, 0.0  ;;  %v482_v40 = vmul.f32 0.01, %v474_v38 }
 0x15a   :  { %v484_v45 = vsel %vm480_vm4, %v474_v38, %v482_v40 }
 0x15b   :  { %v512_v48 = vand.u32 4294901760, %v484_v45 }
 0x15d   :  { %v477_v49 = vpop.f32.mrf.mxu3  ;;  %v544_v53 = vsub.f32 %v484_v45, %v512_v48 }
 0x15e   :  { %v478_v50 = vadd.f32 %v477_v49, %v451_v46 }
 0x15f   :  { %v545_v58 = vand.u32 4294901760, %v544_v53 }
 0x160   :  { %vm481_vm5 = vcmp.gt.f32.partialorder %v478_v50, 0.0  ;;  %v483_v51 = vmul.f32 0.01, %v478_v50 }
 0x161   :  { %v546_v61 = vsub.f32 %v544_v53, %v545_v58 }
 0x162   :  { %v485_v54 = vsel %vm481_vm5, %v478_v50, %v483_v51 }
 0x163   :  { %v510_v55 = vand.u32 4294901760, %v485_v54  ;;  %v547_v63 = vand.u32 4294901760, %v546_v61 }
 0x165   :  { %v538_v57 = vsub.f32 %v485_v54, %v510_v55  ;;  %511 = vmatpush.msrb.mxu0 %v510_v55  ;;  %595 = vmatpush.msrb.mxu3 %v510_v55 }
 0x167   :  { %513 = vmatpush.msrb.mxu0 %v512_v48  ;;  %570 = vmatpush.msrb.mxu2 %v538_v57  ;;  %v539_v59 = vand.u32 4294901760, %v538_v57 }
 0x168   :  { %597 = vmatpush.msrb.mxu3 %v512_v48  ;;  %519 = vmatmul.f32.vlgmr.msrb.gmra.mxu0 %v518_v56 }
 0x169   :  { %573 = vmatpush.msrb.mxu2 %v544_v53  ;;  %622 = vmatpush.msra.mxu0 %v539_v59  ;;  %v540_v60 = vsub.f32 %v538_v57, %v539_v59 }
 0x16a   :  { %576 = vmatmul.f32.vlgmr.msrb.gmra.mxu2 %v515_v41  ;;  %601 = vmatmul.f32.vlgmr.msrb.gmra.mxu3 %v516_v47 }
 0x16b   :  { %626 = vmatpush.msra.mxu0 %v545_v58  ;;  %v541_v62 = vand.u32 4294901760, %v540_v60  ;;  %715 = vmatpush.msra.mxu2 %v714_v16 }
 0x16c   :  { %745 = vmatpush.msra.mxu3 %v744_v20 }
 0x16d   :  { %542 = vmatpush.msrb.mxu1 %v541_v62  ;;  %768 = vmatpush.msrb.mxu0 %v741_v17 }
 0x16e   :  { %817 = vmatpush.msrb.mxu2 %v742_v18  ;;  %839 = vmatpush.msrb.mxu3 %v714_v16 }
 0x16f   :  { %548 = vmatpush.msrb.mxu1 %v547_v63 }
 0x170   :  { %550 = vmatmul.f32.vlgmr.msrb.gmra.mxu1 %v514_v35  ;;  %628 = vmatmul.f32.vlgmr.msra.gmra.mxu0 %v514_v35 }
 0x171   :  { %647 = vmatpush.msra.mxu1 %v510_v55 }
 0x173   :  { %649 = vmatpush.msra.mxu1 %v512_v48 }
 0x175   :  { %791 = vmatpush.msrb.mxu1 %v714_v16 }
 0x178   :  { %651 = vmatmul.f32.vlgmr.msra.gmra.mxu1 %v514_v35 }
 0x1e5   :  { %v520_v1 = vpop.f32.mrf.mxu0 }
 0x1e6   :  { %v521_v2 = vadd.f32 %v520_v1, %v491_v0 }
 0x1ed   :  { %v551_v3 = vpop.f32.mrf.mxu1  ;;  %v577_v4 = vpop.f32.mrf.mxu2 }
 0x1ee   :  { %v552_v5 = vadd.f32 %v551_v3, %v521_v2  ;;  %v602_v6 = vpop.f32.mrf.mxu3  ;;  %v629_v8 = vpop.f32.mrf.mxu0 }
 0x1f0   :  { %v578_v7 = vadd.f32 %v577_v4, %v552_v5 }
 0x1f2   :  { %v603_v9 = vadd.f32 %v602_v6, %v578_v7 }
 0x1f4   :  { %v630_v10 = vadd.f32 %v629_v8, %v603_v9 }
 0x1f5   :  { %v652_v11 = vpop.f32.mrf.mxu1 }
 0x1f6   :  { %v653_v12 = vadd.f32 %v652_v11, %v630_v10 }
 0x1f8   :  { %v656_v13 = vmul.f32 0.01, %v653_v12  ;;  %vm655_vm6 = vcmp.gt.f32.partialorder %v653_v12, 0.0 }
 0x1fa   :  { %v657_v14 = vsel %vm655_vm6, %v653_v12, %v656_v13 }
 0x1fb   :  { %663 = vxpose.xlu2.b32.start.end [1/1] (short) (narrow) %v657_v14, 8 }
 0x294   :  { %v679_v21 = vpop.trf.xlu2 }
 0x295   :  { %v697_v22 = vsel %vm695_vm7, %v679_v21, 0 }
 0x296   :  { %v716_v23 = vand.u32 4294901760, %v697_v22 }
 0x298   :  { %v717_v24 = vsub.f32 %v697_v22, %v716_v23  ;;  %747 = vmatmul.f32.vlgmr.msra.gmra.mxu3 %v716_v23 }
 0x29a   :  { %v718_v25 = vand.u32 4294901760, %v717_v24  ;;  %771 = vmatmul.f32.vlgmr.msrb.gmra.mxu0 %v717_v24 }
 0x29c   :  { %v719_v26 = vsub.f32 %v717_v24, %v718_v25  ;;  %795 = vmatmul.f32.vlgmr.msrb.gmra.mxu1 %v718_v25 }
 0x29e   :  { %v720_v27 = vand.u32 4294901760, %v719_v26 }
 0x2a0   :  { %721 = vmatmul.f32.vlgmr.msra.gmra.mxu2 %v720_v27  ;;  %841 = vmatmul.f32.vlgmr.msrb.gmra.mxu3 %v716_v23 }
 0x2a8   :  { %819 = vmatmul.f32.vlgmr.msrb.gmra.mxu2 %v716_v23 }
 0x317   :  { %v772_v33 = vpop.f32.mrf.mxu0 }
 0x319   :  { %v796_v35 = vpop.f32.mrf.mxu1 }
 0x31b   :  { %v748_v29 = vpop.f32.mrf.mxu3 }
 0x323   :  { %v722_v30 = vpop.f32.mrf.mxu2  ;;  %v842_v39 = vpop.f32.mrf.mxu3 }
 0x324   :  { %v723_v31 = vadd.f32 %v897_v28, %v722_v30 }
 0x326   :  { %v749_v32 = vadd.f32 %v748_v29, %v723_v31 }
 0x328   :  { %v773_v34 = vadd.f32 %v772_v33, %v749_v32 }
 0x32a   :  { %v797_v36 = vadd.f32 %v796_v35, %v773_v34 }
 0x32b   :  { %v820_v37 = vpop.f32.mrf.mxu2 }
 0x32c   :  { %v821_v38 = vadd.f32 %v820_v37, %v797_v36 }
 0x32e   :  { %v843_v40 = vadd.f32 %v842_v39, %v821_v38 }
 0x330   :  { %v846_v41 = vsel %vm845_vm8, %v843_v40, -inf }
 0x331   :  { %847 = vmax.xlane.f32.xlu0 %v846_v41 }
 0x3a4   :  { %v848_v42 = vpop.xlane.xlu0 %847 }
 0x3a5   :  { %v849_v43 = vsub.f32 %v843_v40, %v848_v42 }
 0x3a7   :  { %v850_v44 = vmul.f32 1.442695, %v849_v43 }
 0x3a9   :  { %898 = vpow2.f32 %v850_v44 }
 0x3af   :  { %v899_v45 = vpop.eup %898 }
 0x3b0   :  { %v852_v46 = vsel %vm845_vm8, %v899_v45, 0.0 }
 0x3b1   :  { %853 = vadd.xlane.f32.xlu1 %v852_v46 }
 0x424   :  { %v854_v47 = vpop.xlane.xlu1 %853 }
 0x425   :  { %900 = vrcp.f32 %v854_v47  ;;  %v866_v51 = vand.u32 2147483648, %v854_v47  ;;  %v864_v53 = vand.u32 2147483647, %v854_v47  ;;  %vm860_vm10 = vweird.f32 %v854_v47 }
 0x427   :  { %v867_v55 = vor.u32 1.1754944e-38, %v866_v51  ;;  %vm865_vm12 = vcmp.eq.f32.partialorder %v864_v53, 8.507059e+37 }
 0x42b   :  { %v901_v48 = vpop.eup %900 }
 0x42c   :  { %v856_v49 = vmul.f32 %v901_v48, %v854_v47  ;;  %vm861_vm9 = vweird.f32 %v901_v48 }
 0x42d   :  { %vm862_vm11 = vmor %vm860_vm10, %vm861_vm9 }
 0x42e   :  { %v857_v50 = vsub.f32 1.0, %v856_v49 }
 0x430   :  { %v858_v52 = vmul.f32 %v901_v48, %v857_v50 }
 0x432   :  { %v859_v54 = vadd.f32 %v901_v48, %v858_v52 }
 0x434   :  { %v863_v56 = vsel %vm862_vm11, %v901_v48, %v859_v54 }
 0x435   :  { %v868_v57 = vsel %vm865_vm12, %v867_v55, %v863_v56 }
 0x436   :  { %v869_v58 = vmul.f32 %v899_v45, %v868_v57 }
 0x438   :  { %870 = vst.msk [vmem:[#allocation7] sm:$0xff] %vm845_vm8, %v869_v58 }
 0x439   :  { %881 = dma.vmem_to_hbm [thread:$0]  %s877_s12, 128, %s879_s15, [#allocation4]  }
 0x43a   :  { %978 = dma.done.wait [#allocation4], 128  }
 0x43b   :  { %979 = vsyncadd [#allocation4], 4294967168 }
 0x43c   :  { %886 = vsyncpa [#allocation3], 1 }
 0x43d   :  { %887 = vsyncpa [#allocation6], 1 }
 0x43e   :  { %888 = vsyncpa [#allocation4], 1 }

</bundles_post_ra>
